<compile_context>
chip_gen: v5e
topology: v5e:2x2
jax: 0.10.0
libtpu: 0.0.40
codegen_flags: <defaults>
</compile_context>

<pallas_src>
import functools

import jax
import jax.numpy as jnp
from jax.experimental import pallas as pl
from jax.experimental.pallas import tpu as pltpu

HIDDEN = 768
NUM_LABELS = 18
NL_PAD = 128          # lane-dense padded logits width (18 -> 128)


def _choose_tm(bl):
    """Output rows per grid step.  Aim for >=2 tiles so v7x's two TensorCores both
    get work on small problems; full 128-row MXU M dimension for large problems."""
    if bl >= 256:
        return 128
    half = -(-bl // 2)                       # ceil(bl / 2)
    return max(8, ((half + 7) // 8) * 8)     # round up to sublane multiple


def _head_kernel(dst_ref,        # SMEM [BL_pad]      int32 (scalar prefetch, compacted)
                 src_ref,        # SMEM [BL_pad]      int32 (scalar prefetch, compacted)
                 nvalid_ref,     # SMEM [num_tiles]   int32 (scalar prefetch)
                 seq_ref,        # ANY/HBM [B*S, H]   (no auto-DMA)
                 w_ref,          # VMEM [H, NL_PAD]   bf16
                 b_ref,          # VMEM [1, NL_PAD]   float32
                 logits_ref,     # VMEM [TM, NL_PAD]  output tile (f32)
                 embeds_ref,     # VMEM [TM, H]       output tile (seq dtype)
                 copy_sem,       # DMA semaphore
                 *, tm):
    i = pl.program_id(0)
    base = i * tm
    nvalid = nvalid_ref[i]

    # Zero the whole embeds tile once (vectorized, lane-dense store); the row DMAs
    # below only overwrite the valid rows.
    embeds_ref[...] = jnp.zeros_like(embeds_ref)

    # Fast path: tile holds only padding / untouched rows -> logits == bias.
    @pl.when(nvalid == 0)
    def _():
        logits_ref[...] = jnp.broadcast_to(
            b_ref[...], logits_ref.shape).astype(logits_ref.dtype)

    @pl.when(nvalid > 0)
    def _():
        # DMA-gather: read only the selected rows from HBM, written straight into the
        # embeds output tile at their destination rows (no full-sequence residency).
        @pl.loop(0, nvalid)
        def _(j):
            src = src_ref[base + j]
            dst = dst_ref[base + j]
            pltpu.make_async_copy(
                seq_ref.at[pl.ds(src, 1), :],
                embeds_ref.at[pl.ds(dst, 1), :],
                copy_sem,
            ).start()

        # Drain: each wait retires one row-sized transfer on the shared semaphore
        # (the descriptor only needs the matching transfer size).
        @pl.loop(0, nvalid)
        def _(j):
            pltpu.make_async_copy(
                seq_ref.at[pl.ds(0, 1), :],
                embeds_ref.at[pl.ds(0, 1), :],
                copy_sem,
            ).wait()

        # Classifier matmul: bf16 operands (MXU-native on v5e/v6e), f32 accumulation.
        logits_ref[...] = (
            jnp.dot(embeds_ref[...].astype(w_ref.dtype), w_ref[...],
                    preferred_element_type=jnp.float32)
            + b_ref[...]
        ).astype(logits_ref.dtype)


def bert_classifier_head(sequence_output, selects, copies, weight_t, bias,
                         batch_size, max_word_length, *, num_labels=NUM_LABELS):
    """sequence_output: [B, S, H]; selects/copies: [N] int32;
       weight_t: [H, num_labels] (transposed nn.Linear weight); bias: [num_labels].
       Returns (logits [B, L, num_labels], embeds [B, L, H])."""
    B, S, H = sequence_output.shape
    assert B == batch_size, "batch_size arg must match sequence_output batch dim"
    L = max_word_length
    BL = batch_size * L

    TM = _choose_tm(BL)
    BL_pad = ((BL + TM - 1) // TM) * TM
    num_tiles = BL_pad // TM

    seq_flat = sequence_output.reshape(B * S, H)

    # Fold index_select + index_copy into a per-output-row source index (-1 = zero row).
    # Out-of-range `selects` are clamped; duplicate `copies` pick an unspecified winner
    # (same undefined behavior as torch.index_copy_), and out-of-range `copies` are
    # silently dropped by the scatter.
    selects = jnp.clip(selects.astype(jnp.int32), 0, B * S - 1)
    row_src = jnp.full((BL_pad,), -1, dtype=jnp.int32)
    row_src = row_src.at[copies].set(selects)

    # Per-tile compaction: valid (dst_local, src) pairs first, so the kernel loops only
    # 0..nvalid and issues exactly one row DMA per valid row.
    row_src_t = row_src.reshape(num_tiles, TM)
    valid = row_src_t >= 0
    tile_nvalid = valid.sum(axis=1).astype(jnp.int32)
    order = jnp.argsort(jnp.where(valid, 0, 1).astype(jnp.int32), axis=1)  # stable
    dst_local = jnp.broadcast_to(
        jnp.arange(TM, dtype=jnp.int32)[None, :], (num_tiles, TM))
    dst_rows = jnp.take_along_axis(dst_local, order, axis=1).reshape(-1)
    src_rows = jnp.maximum(
        jnp.take_along_axis(row_src_t, order, axis=1), 0).reshape(-1)
    # TODO(synk): at very large BL the flat scalar-prefetch tables pad to the next
    # power of two in SMEM; chunk them per grid step if SMEM pressure bites.

    # Lane-pad classifier params to 128 output columns (sliced back below).
    # Weight pre-cast to bf16 for the MXU; bias kept f32 for the accumulate/add.
    w_pad = jnp.zeros((H, NL_PAD), jnp.bfloat16)
    w_pad = w_pad.at[:, :num_labels].set(weight_t.astype(jnp.bfloat16))
    b_pad = jnp.zeros((1, NL_PAD), jnp.float32)
    b_pad = b_pad.at[0, :num_labels].set(bias.astype(jnp.float32))

    # Derived VMEM budget: double-buffered output tiles + weight/bias + headroom,
    # capped at 32 MiB (v7x scoped default; well under its 64 MiB physical VMEM).
    seq_elt = jnp.dtype(sequence_output.dtype).itemsize
    buf_bytes = (2 * TM * H * seq_elt          # embeds out tiles
                 + 2 * TM * NL_PAD * 4         # logits out tiles
                 + 2 * (H * NL_PAD * 2 + NL_PAD * 4))   # weight (bf16) + bias
    vmem_limit = int(min(32 << 20, max(16 << 20, 2 * buf_bytes + (4 << 20))))

    kernel = functools.partial(_head_kernel, tm=TM)

    logits_pad, embeds_pad = pl.pallas_call(
        kernel,
        out_shape=(
            jax.ShapeDtypeStruct((BL_pad, NL_PAD), jnp.float32),
            jax.ShapeDtypeStruct((BL_pad, H), sequence_output.dtype),
        ),
        grid_spec=pltpu.PrefetchScalarGridSpec(
            num_scalar_prefetch=3,
            grid=(num_tiles,),
            in_specs=[
                pl.BlockSpec(memory_space=pl.ANY),                  # sequence (HBM)
                pl.BlockSpec((H, NL_PAD), lambda i, *_: (0, 0)),    # weight
                pl.BlockSpec((1, NL_PAD), lambda i, *_: (0, 0)),    # bias
            ],
            out_specs=[
                pl.BlockSpec((TM, NL_PAD), lambda i, *_: (i, 0)),   # logits tile
                pl.BlockSpec((TM, H), lambda i, *_: (i, 0)),        # embeds tile
            ],
            scratch_shapes=[pltpu.SemaphoreType.DMA],
        ),
        compiler_params=pltpu.CompilerParams(
            dimension_semantics=("parallel",),
            vmem_limit_bytes=vmem_limit,
        ),
    )(dst_rows, src_rows, tile_nvalid, seq_flat, w_pad, b_pad)

    logits = logits_pad[:BL, :num_labels].reshape(B, L, num_labels)
    embeds = embeds_pad[:BL, :].reshape(B, L, H)
    return logits, embeds


def _reference(sequence_output, selects, copies, weight_t, bias, B, L):
    H = sequence_output.shape[-1]
    seq_flat = sequence_output.reshape(-1, H)
    chosen = seq_flat[selects]                                          # index_select
    buf = jnp.zeros((B * L, H), seq_flat.dtype).at[copies].set(chosen)  # index_copy
    embeds = buf.reshape(B, L, H)
    logits = embeds @ weight_t + bias
    return logits, embeds


if __name__ == "__main__":
    key = jax.random.PRNGKey(0)
    k_seq, k_w, k_b = jax.random.split(key, 3)

    B, S, L = 2, 16, 8             # batch, seq_len, max_word_length
    N = 10                         # number of selected sub-word positions

    sequence_output = jax.random.normal(k_seq, (B, S, HIDDEN), dtype=jnp.float32)

    # Classifier params (nn.Linear(768, 18)) stored transposed: [H, NUM_LABELS].
    weight_t = (jax.random.normal(k_w, (HIDDEN, NUM_LABELS), dtype=jnp.float32)
                * (1.0 / jnp.sqrt(HIDDEN)))
    bias = jax.random.normal(k_b, (NUM_LABELS,), dtype=jnp.float32) * 0.01

    # Deterministic index tables (distinct, in-range).
    selects = jnp.array([1, 3, 5, 7, 9, 17, 19, 21, 23, 25], dtype=jnp.int32)  # < B*S
    copies = jnp.array([0, 1, 2, 3, 4, 8, 9, 10, 11, 12], dtype=jnp.int32)     # < B*L

    logits, embeds = bert_classifier_head(
        sequence_output, selects, copies, weight_t, bias, B, L)
    jax.block_until_ready((logits, embeds))

    ref_logits, ref_embeds = _reference(
        sequence_output, selects, copies, weight_t, bias, B, L)

    assert logits.shape == (B, L, NUM_LABELS)
    assert embeds.shape == (B, L, HIDDEN)
    # Embeds are exact row copies (DMA) / zeros.
    assert jnp.allclose(embeds, ref_embeds, atol=1e-6)
    # Logits computed with bf16 MXU operands + f32 accumulation vs f32 reference.
    assert jnp.allclose(logits, ref_logits, atol=2e-2, rtol=2e-2)

    print("KERNEL_OK")
</pallas_src>

<mosaic_0001>
module attributes {stable_mosaic.version = 11 : i64} {
  func.func @_head_kernel(%arg0: i32, %arg1: memref<16xi32, #tpu.memory_space<smem>>, %arg2: memref<16xi32, #tpu.memory_space<smem>>, %arg3: memref<2xi32, #tpu.memory_space<smem>>, %arg4: memref<32x768xf32, #tpu.memory_space<any>>, %arg5: memref<768x128xbf16, #tpu.memory_space<vmem>>, %arg6: memref<1x128xf32, #tpu.memory_space<vmem>>, %arg7: memref<8x128xf32, #tpu.memory_space<vmem>>, %arg8: memref<8x768xf32, #tpu.memory_space<vmem>>, %arg9: memref<!tpu.dma_semaphore, #tpu.memory_space<semaphore_mem>>) attributes {dimension_semantics = [#tpu.dimension_semantics<parallel>], iteration_bounds = array<i64: 2>, scalar_prefetch = 3 : i64, scratch_operands = 1 : i64, tpu.core_type = #tpu.core_type<tc>, window_params = [{}, {pipeline_mode = #tpu.pipeline_mode<synchronous>, transform_indices = @transform_1, window_bounds = array<i64: 768, 128>}, {pipeline_mode = #tpu.pipeline_mode<synchronous>, transform_indices = @transform_2, window_bounds = array<i64: 1, 128>}, {transform_indices = @transform_3, window_bounds = array<i64: 8, 128>}, {transform_indices = @transform_4, window_bounds = array<i64: 8, 768>}]} {
    %c8_i32 = arith.constant 8 : i32
    %0 = arith.muli %arg0, %c8_i32 : i32
    %1 = arith.index_cast %arg0 : i32 to index
    %2 = memref.load %arg3[%1] : memref<2xi32, #tpu.memory_space<smem>>
    %cst = arith.constant 0.000000e+00 : f32
    %3 = vector.broadcast %cst : f32 to vector<8x768xf32>
    %c0 = arith.constant 0 : index
    %c0_0 = arith.constant 0 : index
    %4 = vector.load %arg8[%c0, %c0_0] : memref<8x768xf32, #tpu.memory_space<vmem>>, vector<8x768xf32>
    tpu.vector_store %arg8[%c0, %c0_0], %3 {strides = array<i32>} : memref<8x768xf32, #tpu.memory_space<vmem>>, vector<8x768xf32>,
    %c0_i32 = arith.constant 0 : i32
    %5 = arith.cmpi eq, %2, %c0_i32 : i32
    %6 = arith.extui %5 : i1 to i32
    %c0_i32_1 = arith.constant 0 : i32
    %7 = arith.cmpi ne, %6, %c0_i32_1 : i32
    scf.if %7 {
      %c0_4 = arith.constant 0 : index
      %c0_5 = arith.constant 0 : index
      %11 = vector.load %arg6[%c0_4, %c0_5] : memref<1x128xf32, #tpu.memory_space<vmem>>, vector<1x128xf32>
      %12 = vector.shape_cast %11 : vector<1x128xf32> to vector<1x128xf32>
      %13 = vector.broadcast %12 : vector<1x128xf32> to vector<8x128xf32>
      %c0_6 = arith.constant 0 : index
      %c0_7 = arith.constant 0 : index
      %14 = vector.load %arg7[%c0_6, %c0_7] : memref<8x128xf32, #tpu.memory_space<vmem>>, vector<8x128xf32>
      tpu.vector_store %arg7[%c0_6, %c0_7], %13 {strides = array<i32>} : memref<8x128xf32, #tpu.memory_space<vmem>>, vector<8x128xf32>,
    } else {
    }
    %c0_i32_2 = arith.constant 0 : i32
    %8 = arith.cmpi sgt, %2, %c0_i32_2 : i32
    %9 = arith.extui %8 : i1 to i32
    %c0_i32_3 = arith.constant 0 : i32
    %10 = arith.cmpi ne, %9, %c0_i32_3 : i32
    scf.if %10 {
      %c0_i32_4 = arith.constant 0 : i32
      %11 = arith.subi %2, %c0_i32_4 : i32
      %c1_i32 = arith.constant 1 : i32
      %c1_i32_5 = arith.constant 1 : i32
      %12 = arith.subi %c1_i32, %c1_i32_5 : i32
      %13 = arith.addi %11, %12 : i32
      %c1_i32_6 = arith.constant 1 : i32
      %14 = arith.divsi %13, %c1_i32_6 : i32
      %c1_i32_7 = arith.constant 1 : i32
      %c0_i32_8 = arith.constant 0 : i32
      %c0_i32_9 = arith.constant 0 : i32
      %15 = arith.subi %14, %c0_i32_9 : i32
      %16 = arith.addi %c0_i32_9, %15 : i32
      %c1_i32_10 = arith.constant 1 : i32
      scf.for %arg10 = %c0_i32_9 to %16 step %c1_i32_10  : i32 {
        %31 = arith.muli %arg10, %c1_i32_7 : i32
        %32 = arith.addi %c0_i32_8, %31 : i32
        %33 = arith.addi %0, %32 : i32
        %34 = arith.index_cast %33 : i32 to index
        %35 = memref.load %arg2[%34] : memref<16xi32, #tpu.memory_space<smem>>
        %36 = arith.addi %0, %32 : i32
        %37 = arith.index_cast %36 : i32 to index
        %38 = memref.load %arg1[%37] : memref<16xi32, #tpu.memory_space<smem>>
        %c0_i32_28 = arith.constant 0 : i32
        %39 = tpu.memref_slice %arg4[%35, %c0_i32_28] : memref<32x768xf32, #tpu.memory_space<any>> -> memref<1x768xf32, #tpu.memory_space<any>>
        %c0_i32_29 = arith.constant 0 : i32
        %40 = tpu.memref_slice %arg8[%38, %c0_i32_29] : memref<8x768xf32, #tpu.memory_space<vmem>> -> memref<1x768xf32, #tpu.memory_space<vmem>>
        tpu.enqueue_dma source(%39 : memref<1x768xf32, #tpu.memory_space<any>>) target(%40 : memref<1x768xf32, #tpu.memory_space<vmem>>) target_semaphore(%arg9 : memref<!tpu.dma_semaphore, #tpu.memory_space<semaphore_mem>>)
      }
      %c0_i32_11 = arith.constant 0 : i32
      %17 = arith.subi %2, %c0_i32_11 : i32
      %c1_i32_12 = arith.constant 1 : i32
      %c1_i32_13 = arith.constant 1 : i32
      %18 = arith.subi %c1_i32_12, %c1_i32_13 : i32
      %19 = arith.addi %17, %18 : i32
      %c1_i32_14 = arith.constant 1 : i32
      %20 = arith.divsi %19, %c1_i32_14 : i32
      %c1_i32_15 = arith.constant 1 : i32
      %c0_i32_16 = arith.constant 0 : i32
      %c0_i32_17 = arith.constant 0 : i32
      %21 = arith.subi %20, %c0_i32_17 : i32
      %22 = arith.addi %c0_i32_17, %21 : i32
      %c1_i32_18 = arith.constant 1 : i32
      scf.for %arg10 = %c0_i32_17 to %22 step %c1_i32_18  : i32 {
        %31 = arith.muli %arg10, %c1_i32_15 : i32
        %32 = arith.addi %c0_i32_16, %31 : i32
        %c0_i32_28 = arith.constant 0 : i32
        %c0_i32_29 = arith.constant 0 : i32
        %33 = tpu.memref_slice %arg4[%c0_i32_28, %c0_i32_29] : memref<32x768xf32, #tpu.memory_space<any>> -> memref<1x768xf32, #tpu.memory_space<any>>
        %c0_i32_30 = arith.constant 0 : i32
        %c0_i32_31 = arith.constant 0 : i32
        %34 = tpu.memref_slice %arg8[%c0_i32_30, %c0_i32_31] : memref<8x768xf32, #tpu.memory_space<vmem>> -> memref<1x768xf32, #tpu.memory_space<vmem>>
        tpu.wait_dma2 semaphore(%arg9 : memref<!tpu.dma_semaphore, #tpu.memory_space<semaphore_mem>>) src(%33 : memref<1x768xf32, #tpu.memory_space<any>>) dst(%34 : memref<1x768xf32, #tpu.memory_space<vmem>>)
      }
      %c0_19 = arith.constant 0 : index
      %c0_20 = arith.constant 0 : index
      %23 = vector.load %arg8[%c0_19, %c0_20] : memref<8x768xf32, #tpu.memory_space<vmem>>, vector<8x768xf32>
      %24 = arith.truncf %23 : vector<8x768xf32> to vector<8x768xbf16>
      %c0_21 = arith.constant 0 : index
      %c0_22 = arith.constant 0 : index
      %25 = vector.load %arg5[%c0_21, %c0_22] : memref<768x128xbf16, #tpu.memory_space<vmem>>, vector<768x128xbf16>
      %cst_23 = arith.constant dense<0.000000e+00> : vector<8x128xf32>
      %26 = tpu.matmul %24, %25, %cst_23 {dimension_numbers = #tpu.dot_dimension_numbers<[1], [0], [0], [1], [0, 0, 1, 1], [], []>} : vector<8x768xbf16>, vector<768x128xbf16>, vector<8x128xf32> -> vector<8x128xf32>
      %c0_24 = arith.constant 0 : index
      %c0_25 = arith.constant 0 : index
      %27 = vector.load %arg6[%c0_24, %c0_25] : memref<1x128xf32, #tpu.memory_space<vmem>>, vector<1x128xf32>
      %28 = vector.broadcast %27 : vector<1x128xf32> to vector<8x128xf32>
      %29 = arith.addf %26, %28 : vector<8x128xf32>
      %c0_26 = arith.constant 0 : index
      %c0_27 = arith.constant 0 : index
      %30 = vector.load %arg7[%c0_26, %c0_27] : memref<8x128xf32, #tpu.memory_space<vmem>>, vector<8x128xf32>
      tpu.vector_store %arg7[%c0_26, %c0_27], %29 {strides = array<i32>} : memref<8x128xf32, #tpu.memory_space<vmem>>, vector<8x128xf32>,
    } else {
    }
    return
  }
  func.func @transform_1(%arg0: i32, %arg1: memref<16xi32, #tpu.memory_space<smem>>, %arg2: memref<16xi32, #tpu.memory_space<smem>>, %arg3: memref<2xi32, #tpu.memory_space<smem>>) -> (i32, i32) {
    %c0_i32 = arith.constant 0 : i32
    %c0_i32_0 = arith.constant 0 : i32
    %c0_i32_1 = arith.constant 0 : i32
    return %c0_i32, %c0_i32_0 : i32, i32
  }
  func.func @transform_2(%arg0: i32, %arg1: memref<16xi32, #tpu.memory_space<smem>>, %arg2: memref<16xi32, #tpu.memory_space<smem>>, %arg3: memref<2xi32, #tpu.memory_space<smem>>) -> (i32, i32) {
    %c0_i32 = arith.constant 0 : i32
    %c0_i32_0 = arith.constant 0 : i32
    %c0_i32_1 = arith.constant 0 : i32
    return %c0_i32, %c0_i32_0 : i32, i32
  }
  func.func @transform_3(%arg0: i32, %arg1: memref<16xi32, #tpu.memory_space<smem>>, %arg2: memref<16xi32, #tpu.memory_space<smem>>, %arg3: memref<2xi32, #tpu.memory_space<smem>>) -> (i32, i32) {
    %c0_i32 = arith.constant 0 : i32
    %c0_i32_0 = arith.constant 0 : i32
    return %arg0, %c0_i32 : i32, i32
  }
  func.func @transform_4(%arg0: i32, %arg1: memref<16xi32, #tpu.memory_space<smem>>, %arg2: memref<16xi32, #tpu.memory_space<smem>>, %arg3: memref<2xi32, #tpu.memory_space<smem>>) -> (i32, i32) {
    %c0_i32 = arith.constant 0 : i32
    %c0_i32_0 = arith.constant 0 : i32
    return %arg0, %c0_i32 : i32, i32
  }
}

</mosaic_0001>

<bundles_post_ra>
// kernel: tpu_custom_call.1
= control target key start
LH: loop header
LB: loop body
LE: loop exit
PB: predicated region body
PF: predicated region fallthrough
CT: control target
= control target key end

     0   :  { %s1435_s30 = smov [#allocation4]   ;;  %s1436_s8 = smov [#allocation5]   ;;  %s1676_s0 = inlined_call_operand.hbm [shape: s32[16], index: 0, kind: input, shape index: {}]   ;;  %s1677_s3 = inlined_call_operand.hbm [shape: f32[32,768], index: 3, kind: input, shape index: {}]   ;;  %s1678_s4 = inlined_call_operand.hbm [shape: bf16[768,128], index: 4, kind: input, shape index: {}]   ;;  %s1679_s5 = inlined_call_operand.vmem [shape: f32[1,128], index: 5, kind: input, shape index: {}]   ;;  %s1680_s6 = inlined_call_operand.hbm [shape: f32[16,128], index: 6, kind: output, shape index: {0}]   ;;  %s1681_s7 = inlined_call_operand.hbm [shape: f32[16,768], index: 7, kind: output, shape index: {1}]   ;;  %s1682_s1 = inlined_call_operand.hbm [shape: s32[16], index: 1, kind: input, shape index: {}]   ;;  %s1683_s2 = inlined_call_operand.vmem [shape: s32[2], index: 2, kind: input, shape index: {}]  }
   0x1   :  { %1688 = sst [smem:[#allocation23_spill]] %s1678_s4  ;;  %s14_s26 = sshll.u32 %s1676_s0, 4  ;;  %s15_s26 = int_to_ptr.hbm [resolvable:$true] %s14_s26 }
   0x2   :  { %s19_s29 = sshll.u32 %s1682_s1, 4  ;;  %s24_s11 = sshll.u32 %s1683_s2, 4  ;;  %s20_s29 = int_to_ptr.hbm [resolvable:$true] %s19_s29  ;;  %s25_s11 = int_to_ptr.vmem [resolvable:$true] %s24_s11 }
   0x3   :  { %17 = dma.hbm_to_smem %s15_s26, 16, %s1435_s30, [#allocation3] }
   0x4   :  { %22 = dma.hbm_to_smem %s20_s29, 16, %s1436_s8, [#allocation3] }
   0x5   :  { %s1437_s12 = smov [#allocation6]  }
   0x6   :  { %27 = dma.vmem_to_smem %s25_s11, 16, %s1437_s12, [#allocation3] }
   0x7   :  { %1395 = dma.done.wait [#allocation3], 48 }
   0x8   :  { %1396 = vsyncadd [#allocation3], 4294967248 }
   0x9   :  { %30 = sfence }
   0xa   :  { %31 = vsyncpa [#allocation8], 0 }
   0xb   :  { %32 = vsyncpa [#allocation9], 0 }
   0xc   :  { %34 = vsyncpa [#allocation9 + $0x1], 0 }
   0xd   :  { %35 = vsyncpa [#allocation12], 0 }
   0xe   :  { %37 = vsyncpa [#allocation12 + $0x1], 0  ;;  %s1494_s0 = smov 0   ;;  %s1496_s1 = smov 0  }
   0xf   :  { %s1498_s13 = smov 0   ;;  %s1500_s14 = smov 0  }
  0x10 LB: > { %1689 = sst [smem:[#allocation19_spill]] %s1417_s1  ;;  %s1515_s2 = sadd.s32 4294967295, %s1425_s14   ;;  %s1425_s14 = sphi %s1500_s14, %s1698_s14   ;;  %s1421_s13 = sphi %s1498_s13, %s1701_s13   ;;  %s1417_s1 = sphi %s1496_s1, %s1700_s1   ;;  %s1413_s0 = sphi %s1494_s0, %s1699_s0  }
  0x11   : > { %1690 = sst [smem:[#allocation20_spill]] %s1421_s13  ;;  %s885_s15 = sadd.s32 4294967294, %s1425_s14  }
  0x12   : > { %s1519_s16 = sadd.s32 1, %s1425_s14   ;;  %s92_s17 = sadd.s32 1, %s1421_s13 }
  0x13   : > { %1691 = sst [smem:[#allocation21_spill]] %s1519_s16  ;;  %s89_s18 = ssub.s32 %s1425_s14, %s1519_s16 }
  0x14   : > { %p102_p0 = scmp.ne.s32.totalorder %s1421_s13, %s1417_s1  ;;  %p90_p1 = scmp.eq.s32.totalorder %s89_s18, 0 }
  0x15   : > { %p103_p2 = scmp.eq.s32.totalorder %s1515_s2, 1  ;;  %p108_p3 = scmp.ne.s32.totalorder %s1417_s1, %s1413_s0 }
  0x16   : > { %p109_p4 = scmp.eq.s32.totalorder %s885_s15, 1  ;;  %p886_p7 = scmp.ge.s32.totalorder %s1425_s14, 1 }
  0x17   : > { %s1530_s19 = scalar_select %p90_p1, %s1421_s13, %s92_s17  }
  0x18   : > { %p1532_p5 = por %p103_p2, %p102_p0  ;;  %p1536_p6 = por %p109_p4, %p108_p3 }
  0x19   : > { %1692 = sst [smem:[#allocation22_spill]] %s1530_s19  ;;  %p142_p8 = scmp.lt.s32.totalorder %s1425_s14, 3 }
  0x1a   : > { %p1163_p9 = scmp.eq.s32.totalorder %s1515_s2, 0  ;;  %s1695_s4 = sld [smem:[#allocation23_spill]] }
  0x1b   : > { %p143_p10 = pnand %p886_p7, %p142_p8  ;;  %s1438_s25 = smov [#allocation7]  }
  0x1c   : > { %s155_s26 = sshll.u32 %s1438_s25, 4  ;;  %s1439_s27 = smov 64   ;;  %s156_s26 = int_to_ptr.vmem [resolvable:$true] %s155_s26 }
  0x1d   : > { %p1152_p11 = pneg %p143_p10  ;;  %s1440_s28 = smov 4  }
  0x1e   : > { %174 = sbr.rel (%p143_p10) target bundleno = 351 (0x15f), region = 28 }
  0x1f   : > { %p1153_p12 = pnand %p1163_p9, %p1152_p11 }
  0x20   : > { %s153_s24 = sshll.u32 %s1695_s4, 4  ;;  %s154_s24 = int_to_ptr.hbm [resolvable:$true] %s153_s24 }
  0x21   : > { %1155 = dma.hbm_to_vmem [thread:$0]  (!%p1153_p12), %s154_s24, 6144, %s156_s26, [#allocation8], %s1439_s27, %s1439_s27, %s1440_s28  }
  0x23   : > { %1398 = dma.done.wait (%p1163_p9), [#allocation8], 6144  }
  0x24   : > { %1400 = vsyncadd (%p1163_p9), [#allocation8], 4294961152  ;;  %s1553_s29 = sand.u32 1, %s1417_s1   ;;  %s1557_s8 = sld [smem:[#allocation6 + %s1515_s2]]  ;;  %v1441_v0 = vmov 0.0  }
  0x25   : > { %s890_s9 = sshll.u32 %s1553_s29, 3  ;;  %s1142_s10 = smul.u32 48, %s1553_s29 }
  0x26   : > { %s1569_s12 = scalar_lea.vmem [#allocation10], %s890_s9 }
  0x27   : > { %s1561_s11 = scalar_lea.vmem [#allocation11], %s1142_s10 }
  0x28   : > { %201 = vst [vmem:[%s1561_s11] sm:$0xff] %v1441_v0 }
  0x29   : > { %202 = vst [vmem:[%s1561_s11 + $0x8] sm:$0xff] %v1441_v0 }
  0x2a   : > { %203 = vst [vmem:[%s1561_s11 + $0x10] sm:$0xff] %v1441_v0  ;;  %p892_p13 = scmp.ne.s32.totalorder %s1557_s8, 0 }
  0x2b   : > { %204 = vst [vmem:[%s1561_s11 + $0x18] sm:$0xff] %v1441_v0 }
  0x2c   : > { %205 = vst [vmem:[%s1561_s11 + $0x20] sm:$0xff] %v1441_v0  ;;  %210 = sbr.rel (%p892_p13) target bundleno = 51 (0x33), region = 36 }
  0x2d   : > { %206 = vst [vmem:[%s1561_s11 + $0x28] sm:$0xff] %v1441_v0 }
  0x31   : > { %v1223_v1 = vld [vmem:[%s1679_s5] ss:$0 sm:$0xff] }
  0x32   : > { %215 = vst [vmem:[%s1569_s12] sm:$0xff] %v1223_v1 }
  0x33 PF: > { %p893_p0 = scmp.le.s32.totalorder %s1557_s8, 0 }
  0x35   : > { %219 = sbr.rel (%p893_p0) target bundleno = 320 (0x140), region = 40 }
  0x3a   : > { %844 = sbr.rel (%p893_p0) target bundleno = 106 (0x6a), region = 100  ;;  %s1581_s18 = smov (!%p893_p0), 0  }
  0x3f LB: >> { %s1696_s30 = sshll.u32 %s1515_s2, 3  ;;  %s1295_s4 = scalar_lea.hbm %s1677_s3, 192  ;;  %s1429_s18 = sphi %s1581_s18, %s223_s18  }
  0x40   : >> { %s226_s22 = sadd.s32 %s1429_s18, %s1696_s30 }
  0x41   : >> { %s227_s23 = sld [smem:[#allocation5 + %s226_s22]] }
  0x42   : >> { %s228_s24 = sld [smem:[#allocation4 + %s226_s22]] }
  0x47   : >> { %s229_s25 = sshrl.u32 %s227_s23, 3  ;;  %s230_s26 = sand.u32 7, %s227_s23  }
  0x48   : >> { %s231_s27 = smul.u32 48, %s229_s25  ;;  %s234_s28 = sshrl.u32 %s228_s24, 3 }
  0x49   : >> { %s235_s9 = sand.u32 7, %s228_s24   ;;  %s236_s10 = smul.u32 48, %s234_s28 }
  0x4a   : >> { %s232_s15 = sadd.s32 %s231_s27, %s230_s26 }
  0x4b   : >> { %s233_s19 = scalar_lea.hbm %s1677_s3, %s232_s15  ;;  %s237_s13 = sadd.s32 %s236_s10, %s235_s9 }
  0x4c   : >> { %s238_s1 = scalar_lea.vmem %s1561_s11, %s237_s13 [#allocation11]  ;;  %s1593_s16 = sshll.u32 %s233_s19, 4  ;;  %s240_s16 = int_to_ptr.hbm [resolvable:$true] %s1593_s16 }
  0x4d   : >> { %s1596_s30 = sshll.u32 %s238_s1, 4  ;;  %s1291_s22 = sshra.s32 %s240_s16, 4  ;;  %s242_s30 = int_to_ptr.vmem [resolvable:$true] %s1596_s30  ;;  %s1292_s22 = int_to_ptr.hbm [resolvable:$true] %s1291_s22 }
  0x4e   : >> { %s1293_s23 = scalar_lea.hbm %s1292_s22, 6  ;;  %p1296_p2 = scmp.lt.s32.totalorder %s1292_s22, %s1677_s3 }
  0x4f   : >> { %p1294_p1 = scmp.ne.s32.totalorder %s1292_s22, %s1293_s23  ;;  %p1297_p3 = scmp.lt.s32.totalorder %s1295_s4, %s1293_s23 }
  0x51   : >> { %p1298_p4 = por %p1297_p3, %p1296_p2 }
  0x53   : >> { %p1299_p7 = pnand %p1298_p4, %p1294_p1 }
  0x55   : >> { %1302 = shalt.err (!%p1299_p7)  }
  0x56   : >> { %s1303_s1 = sshra.s32 %s242_s30, 4  ;;  %s1442_s27 = smov [#allocation11]   ;;  %s1304_s1 = int_to_ptr.vmem [resolvable:$true] %s1303_s1 }
  0x57   : >> { %s1305_s19 = scalar_lea.vmem %s1304_s1, 6  ;;  %s1307_s28 = scalar_lea.vmem %s1442_s27, 96 }
  0x58   : >> { %p1306_p8 = scmp.ne.s32.totalorder %s1304_s1, %s1305_s19  ;;  %p1308_p9 = scmp.lt.s32.totalorder %s1304_s1, [#allocation11] }
  0x59   : >> { %p1309_p10 = scmp.lt.s32.totalorder %s1307_s28, %s1305_s19 }
  0x5b   : >> { %p1310_p11 = por %p1309_p10, %p1308_p9 }
  0x5d   : >> { %p1311_p12 = pnand %p1310_p11, %p1306_p8 }
  0x5f   : >> { %1314 = shalt.err (!%p1311_p12)  }
  0x60   : >> { %s1443_s9 = smov 128   ;;  %s1444_s10 = smov 1  }
  0x61   : >> { %246 = dma.hbm_to_vmem [thread:$0]  %s240_s16, 96, %s242_s30, [#allocation2], %s1443_s9, %s1443_s9, %s1444_s10 }
  0x62   : >> { %s223_s18 = sadd.s32 1, %s1429_s18  }
  0x63   : >> { %p222_p13 = scmp.ge.s32.totalorder %s223_s18, %s1557_s8 }
  0x65   : > { %225 = sbr.rel (!%p222_p13) target bundleno = 63 (0x3f), region = 106 }
  0x6a PF: > { %849 = sbr.rel (%p893_p0) target bundleno = 120 (0x78), region = 111  ;;  %s1431_s15 = smov (!%p893_p0), 0  }
  0x6f LB: >> { %1401 = dma.done.wait [#allocation2], 96  ;;  %s1433_s15 = sphi %s1431_s15, %s250_s15  }
  0x70   : >> { %1402 = vsyncadd [#allocation2], 4294967200  ;;  %s250_s15 = sadd.s32 1, %s1433_s15  }
  0x71   : >> { %p249_p1 = scmp.ge.s32.totalorder %s250_s15, %s1557_s8 }
  0x73   : > { %252 = sbr.rel (!%p249_p1) target bundleno = 111 (0x6f), region = 117 }
  0x78 PF:  {}
  0x79   : > { %v1101_v2 = vld [vmem:[#allocation7 + $0x38] sm:$0xff]  ;;  %v1100_v4 = vld [vmem:[#allocation7 + $0x30] sm:$0xff]  ;;  %v1099_v10 = vld [vmem:[#allocation7 + $0x28] sm:$0xff] }
  0x7a   : > { %v1109_v3 = vld [vmem:[#allocation7 + $0x78] sm:$0xff]  ;;  %656 = vmatpush.bf16.msra.mxu0 %v1101_v2  ;;  %v1108_v5 = vld [vmem:[#allocation7 + $0x70] sm:$0xff]  ;;  %v1107_v11 = vld [vmem:[#allocation7 + $0x68] sm:$0xff] }
  0x7b   : > { %669 = vmatpush.bf16.msra.mxu1 %v1109_v3  ;;  %v1117_v6 = vld [vmem:[#allocation7 + $0xb8] sm:$0xff]  ;;  %v1116_v8 = vld [vmem:[#allocation7 + $0xb0] sm:$0xff]  ;;  %v1115_v12 = vld [vmem:[#allocation7 + $0xa8] sm:$0xff] }
  0x7c   : > { %v1125_v7 = vld [vmem:[#allocation7 + $0xf8] sm:$0xff]  ;;  %682 = vmatpush.bf16.msra.mxu2 %v1117_v6  ;;  %v1124_v9 = vld [vmem:[#allocation7 + $0xf0] sm:$0xff]  ;;  %v1123_v13 = vld [vmem:[#allocation7 + $0xe8] sm:$0xff] }
  0x7d   : > { %695 = vmatpush.bf16.msra.mxu3 %v1125_v7  ;;  %v1098_v14 = vld [vmem:[#allocation7 + $0x20] sm:$0xff]  ;;  %v1097_v18 = vld [vmem:[#allocation7 + $0x18] sm:$0xff]  ;;  %v1096_v22 = vld [vmem:[#allocation7 + $0x10] sm:$0xff] }
  0x7e   : > { %657 = vmatpush.bf16.msra.mxu0 %v1100_v4  ;;  %v1106_v15 = vld [vmem:[#allocation7 + $0x60] sm:$0xff]  ;;  %v1105_v19 = vld [vmem:[#allocation7 + $0x58] sm:$0xff]  ;;  %v1104_v23 = vld [vmem:[#allocation7 + $0x50] sm:$0xff] }
  0x7f   : > { %670 = vmatpush.bf16.msra.mxu1 %v1108_v5  ;;  %v1114_v16 = vld [vmem:[#allocation7 + $0xa0] sm:$0xff]  ;;  %v1113_v20 = vld [vmem:[#allocation7 + $0x98] sm:$0xff]  ;;  %v1112_v24 = vld [vmem:[#allocation7 + $0x90] sm:$0xff] }
  0x80   : > { %683 = vmatpush.bf16.msra.mxu2 %v1116_v8  ;;  %v1122_v17 = vld [vmem:[#allocation7 + $0xe0] sm:$0xff]  ;;  %v1121_v21 = vld [vmem:[#allocation7 + $0xd8] sm:$0xff]  ;;  %v1120_v25 = vld [vmem:[#allocation7 + $0xd0] sm:$0xff] }
  0x81   : > { %696 = vmatpush.bf16.msra.mxu3 %v1124_v9  ;;  %v1095_v26 = vld [vmem:[#allocation7 + $0x8] sm:$0xff]  ;;  %v1094_v30 = vld [vmem:[#allocation7] sm:$0xff]  ;;  %v1133_v34 = vld [vmem:[#allocation7 + $0x138] sm:$0xff] }
  0x82   : > { %658 = vmatpush.bf16.msra.mxu0 %v1099_v10  ;;  %v1103_v27 = vld [vmem:[#allocation7 + $0x48] sm:$0xff]  ;;  %v1102_v31 = vld [vmem:[#allocation7 + $0x40] sm:$0xff]  ;;  %v1141_v35 = vld [vmem:[#allocation7 + $0x178] sm:$0xff] }
  0x83   : > { %671 = vmatpush.bf16.msra.mxu1 %v1107_v11  ;;  %v1111_v28 = vld [vmem:[#allocation7 + $0x88] sm:$0xff]  ;;  %v256_v32 = vld [vmem:[%s1561_s11] sm:$0xff]  ;;  %v258_v40 = vld [vmem:[%s1561_s11 + $0x10] sm:$0xff] }
  0x84   : > { %684 = vmatpush.bf16.msra.mxu2 %v1115_v12  ;;  %v1119_v29 = vld [vmem:[#allocation7 + $0xc8] sm:$0xff]  ;;  %v1110_v36 = vld [vmem:[#allocation7 + $0x80] sm:$0xff]  ;;  %v262_v38 = vpack.c.bf16 %v256_v32, %v256_v32  ;;  %v1132_v42 = vld [vmem:[#allocation7 + $0x130] sm:$0xff]  ;;  %v264_v44 = vpack.c.bf16 %v258_v40, %v258_v40 }
  0x85   : > { %697 = vmatpush.bf16.msra.mxu3 %v1123_v13  ;;  %v257_v33 = vld [vmem:[%s1561_s11 + $0x8] sm:$0xff]  ;;  %v1118_v37 = vld [vmem:[#allocation7 + $0xc0] sm:$0xff]  ;;  %v259_v41 = vld [vmem:[%s1561_s11 + $0x18] sm:$0xff] }
  0x86   : > { %659 = vmatpush.bf16.msra.mxu0 %v1098_v14  ;;  %v263_v39 = vpack.c.bf16 %v257_v33, %v257_v33  ;;  %v1140_v43 = vld [vmem:[#allocation7 + $0x170] sm:$0xff]  ;;  %v265_v45 = vpack.c.bf16 %v259_v41, %v259_v41  ;;  %v1131_v46 = vld [vmem:[#allocation7 + $0x128] sm:$0xff]  ;;  %v1130_v48 = vld [vmem:[#allocation7 + $0x120] sm:$0xff] }
  0x87   : > { %672 = vmatpush.bf16.msra.mxu1 %v1106_v15  ;;  %v1139_v47 = vld [vmem:[#allocation7 + $0x168] sm:$0xff]  ;;  %v1138_v49 = vld [vmem:[#allocation7 + $0x160] sm:$0xff]  ;;  %v1129_v50 = vld [vmem:[#allocation7 + $0x118] sm:$0xff] }
  0x88   : > { %685 = vmatpush.bf16.msra.mxu2 %v1114_v16  ;;  %v1137_v51 = vld [vmem:[#allocation7 + $0x158] sm:$0xff]  ;;  %v1128_v52 = vld [vmem:[#allocation7 + $0x110] sm:$0xff]  ;;  %v1127_v54 = vld [vmem:[#allocation7 + $0x108] sm:$0xff] }
  0x89   : > { %698 = vmatpush.bf16.msra.mxu3 %v1122_v17  ;;  %v1136_v53 = vld [vmem:[#allocation7 + $0x150] sm:$0xff]  ;;  %v1135_v55 = vld [vmem:[#allocation7 + $0x148] sm:$0xff]  ;;  %v1126_v56 = vld [vmem:[#allocation7 + $0x100] sm:$0xff] }
  0x8a   : > { %660 = vmatpush.bf16.msra.mxu0 %v1097_v18  ;;  %v1134_v57 = vld [vmem:[#allocation7 + $0x140] sm:$0xff]  ;;  %v261_v59 = vld [vmem:[%s1561_s11 + $0x28] sm:$0xff] }
  0x8b   : > { %673 = vmatpush.bf16.msra.mxu1 %v1105_v19  ;;  %v260_v58 = vld [vmem:[%s1561_s11 + $0x20] sm:$0xff]  ;;  %v267_v61 = vpack.c.bf16 %v261_v59, %v261_v59 }
  0x8c   : > { %686 = vmatpush.bf16.msra.mxu2 %v1113_v20  ;;  %v266_v60 = vpack.c.bf16 %v260_v58, %v260_v58  ;;  %v1224_v4 = vld [vmem:[%s1679_s5] ss:$0 sm:$0xff] }
  0x8d   : > { %699 = vmatpush.bf16.msra.mxu3 %v1121_v21 }
  0x8e   : > { %661 = vmatpush.bf16.msra.mxu0 %v1096_v22 }
  0x8f   : > { %674 = vmatpush.bf16.msra.mxu1 %v1104_v23 }
  0x90   : > { %687 = vmatpush.bf16.msra.mxu2 %v1112_v24 }
  0x91   : > { %700 = vmatpush.bf16.msra.mxu3 %v1120_v25 }
  0x92   : > { %662 = vmatpush.bf16.msra.mxu0 %v1095_v26 }
  0x93   : > { %675 = vmatpush.bf16.msra.mxu1 %v1103_v27 }
  0x94   : > { %688 = vmatpush.bf16.msra.mxu2 %v1111_v28 }
  0x95   : > { %701 = vmatpush.bf16.msra.mxu3 %v1119_v29 }
  0x96   : > { %663 = vmatpush.bf16.msra.mxu0 %v1094_v30 }
  0x97   : > { %676 = vmatpush.bf16.msra.mxu1 %v1102_v31 }
  0x98   : > { %689 = vmatpush.bf16.msra.mxu2 %v1110_v36 }
  0x99   : > { %702 = vmatpush.bf16.msra.mxu3 %v1118_v37  ;;  %664 = vmatmul.bf16.vlgmr.msra.gmra.mxu0 %v262_v38 }
  0x9a   : > { %708 = vmatpush.bf16.msrb.mxu0 %v1133_v34  ;;  %677 = vmatmul.bf16.vlgmr.msra.gmra.mxu1 %v263_v39 }
  0x9b   : > { %721 = vmatpush.bf16.msrb.mxu1 %v1141_v35  ;;  %690 = vmatmul.bf16.vlgmr.msra.gmra.mxu2 %v264_v44 }
  0x9c   : > { %703 = vmatmul.bf16.vlgmr.msra.gmra.mxu3 %v265_v45 }
  0x9e   : > { %709 = vmatpush.bf16.msrb.mxu0 %v1132_v42 }
  0x9f   : > { %722 = vmatpush.bf16.msrb.mxu1 %v1140_v43 }
  0xa2   : > { %710 = vmatpush.bf16.msrb.mxu0 %v1131_v46 }
  0xa3   : > { %723 = vmatpush.bf16.msrb.mxu1 %v1139_v47 }
  0xa6   : > { %711 = vmatpush.bf16.msrb.mxu0 %v1130_v48 }
  0xa7   : > { %724 = vmatpush.bf16.msrb.mxu1 %v1138_v49 }
  0xaa   : > { %712 = vmatpush.bf16.msrb.mxu0 %v1129_v50 }
  0xab   : > { %725 = vmatpush.bf16.msrb.mxu1 %v1137_v51 }
  0xae   : > { %713 = vmatpush.bf16.msrb.mxu0 %v1128_v52 }
  0xaf   : > { %726 = vmatpush.bf16.msrb.mxu1 %v1136_v53 }
  0xb2   : > { %714 = vmatpush.bf16.msrb.mxu0 %v1127_v54 }
  0xb3   : > { %727 = vmatpush.bf16.msrb.mxu1 %v1135_v55 }
  0xb6   : > { %715 = vmatpush.bf16.msrb.mxu0 %v1126_v56 }
  0xb7   : > { %728 = vmatpush.bf16.msrb.mxu1 %v1134_v57 }
  0xb9   : > { %716 = vmatmul.bf16.vlgmr.msrb.gmra.mxu0 %v266_v60 }
  0xba   : > { %729 = vmatmul.bf16.vlgmr.msrb.gmra.mxu1 %v267_v61 }
 0x116   : > { %v665_v62 = vpop.f32.mrf.mxu0 }
 0x117   : > { %v678_v63 = vpop.f32.mrf.mxu1  ;;  %v666_v5 = vadd.f32 %v1224_v4, %v665_v62 }
 0x119   : > { %v679_v8 = vadd.f32 %v678_v63, %v666_v5 }
 0x11e   : > { %v667_v0 = vpop.f32.mrf.mxu0  ;;  %v691_v2 = vpop.f32.mrf.mxu2 }
 0x11f   : > { %v680_v1 = vpop.f32.mrf.mxu1  ;;  %v704_v3 = vpop.f32.mrf.mxu3  ;;  %v692_v9 = vadd.f32 %v691_v2, %v679_v8 }
 0x121   : > { %v705_v10 = vadd.f32 %v704_v3, %v692_v9 }
 0x126   : > { %v693_v6 = vpop.f32.mrf.mxu2 }
 0x127   : > { %v706_v7 = vpop.f32.mrf.mxu3 }
 0x136   : > { %v717_v11 = vpop.f32.mrf.mxu0 }
 0x137   : > { %v730_v12 = vpop.f32.mrf.mxu1  ;;  %v718_v13 = vadd.f32 %v717_v11, %v705_v10 }
 0x139   : > { %v731_v14 = vadd.f32 %v730_v12, %v718_v13 }
 0x13b   : > { %734 = vst [vmem:[%s1569_s12] sm:$0xff] %v731_v14 }
 0x13e   : > { %v719_v15 = vpop.f32.mrf.mxu0 }
 0x13f   : > { %v732_v16 = vpop.f32.mrf.mxu1 }
 0x140 PF: > { %s1697_s8 = sshll.u32 %s1515_s2, 3  ;;  %s753_s23 = sshll.u32 %s1569_s12, 4  ;;  %s754_s23 = int_to_ptr.vmem [resolvable:$true] %s753_s23 }
 0x141   : > { %s751_s22 = scalar_lea.hbm %s1680_s6, %s1697_s8  ;;  %s736_s25 = scalar_lea.sflag [#allocation9], %s1553_s29 }
 0x142   : > { %s755_s24 = sshll.u32 %s751_s22, 4  ;;  %s1335_s19 = scalar_lea.hbm %s1680_s6, 16  ;;  %s756_s24 = int_to_ptr.hbm [resolvable:$true] %s755_s24 }
 0x143   : > { %s1329_s4 = sshra.s32 %s756_s24, 4  ;;  %s1330_s4 = int_to_ptr.hbm [resolvable:$true] %s1329_s4 }
 0x144   : > { %s1331_s26 = scalar_lea.hbm %s1330_s4, 8  ;;  %p1336_p4 = scmp.lt.s32.totalorder %s1330_s4, %s1680_s6 }
 0x145   : > { %p1332_p0 = scmp.ne.s32.totalorder %s1330_s4, %s1331_s26  ;;  %p1337_p7 = scmp.lt.s32.totalorder %s1335_s19, %s1331_s26 }
 0x147   : > { %p1333_p2 = pnand %p1332_p0, %p1532_p5  ;;  %p1338_p8 = por %p1337_p7, %p1336_p4 }
 0x149   : > { %p1334_p3 = pneg %p1333_p2 }
 0x14b   : > { %p1339_p9 = pnand %p1338_p8, %p1334_p3 }
 0x14d   : > { %1342 = shalt.err (!%p1339_p9)
}
 0x14e   : > { %1148 = dma.vmem_to_hbm [thread:$0]  (%p1532_p5), %s754_s23, 128, %s756_s24, %s736_s25  }
 0x14f   : > { %s1143_s12 = smul.u32 48, %s1515_s2  ;;  %s768_s9 = sshll.u32 %s1561_s11, 4  ;;  %s769_s9 = int_to_ptr.vmem [resolvable:$true] %s768_s9 }
 0x150   : > { %s741_s8 = scalar_lea.sflag [#allocation12], %s1553_s29  ;;  %s1363_s2 = scalar_lea.hbm %s1681_s7, 96 }
 0x151   : > { %s766_s16 = scalar_lea.hbm %s1681_s7, %s1143_s12 }
 0x152   : > { %s770_s30 = sshll.u32 %s766_s16, 4  ;;  %s771_s30 = int_to_ptr.hbm [resolvable:$true] %s770_s30 }
 0x153   : > { %s1357_s18 = sshra.s32 %s771_s30, 4  ;;  %s1358_s18 = int_to_ptr.hbm [resolvable:$true] %s1357_s18 }
 0x154   : > { %s1359_s17 = scalar_lea.hbm %s1358_s18, 48  ;;  %p1364_p13 = scmp.lt.s32.totalorder %s1358_s18, %s1681_s7 }
 0x155   : > { %p1360_p10 = scmp.ne.s32.totalorder %s1358_s18, %s1359_s17  ;;  %p1365_p1 = scmp.lt.s32.totalorder %s1363_s2, %s1359_s17 }
 0x157   : > { %p1361_p11 = pnand %p1360_p10, %p1532_p5  ;;  %p1366_p0 = por %p1365_p1, %p1364_p13 }
 0x159   : > { %p1362_p12 = pneg %p1361_p11 }
 0x15b   : > { %p1367_p2 = pnand %p1366_p0, %p1362_p12 }
 0x15d   : > { %1370 = shalt.err (!%p1367_p2)
}
 0x15e   : > { %1149 = dma.vmem_to_hbm [thread:$0]  (%p1532_p5), %s769_s9, 768, %s771_s30, %s741_s8  }
 0x15f PF: > { %p1165_p3 = scmp.ge.s32.totalorder %s1425_s14, 2  ;;  %s782_s29 = sand.u32 1, %s1413_s0  }
 0x160   : > { %s783_s24 = scalar_lea.sflag [#allocation9], %s782_s29 }
 0x161   : > { %p1157_p4 = pnand %p1165_p3, %p1536_p6 }
 0x163   : > { %p1158_p7 = pneg %p1157_p4 }
 0x165   : > { %1404 = dma.done.wait (%p1158_p7), %s783_s24, 128  }
 0x166   : > { %1406 = vsyncadd (%p1158_p7), %s783_s24, 4294967168  ;;  %s793_s25 = scalar_lea.sflag [#allocation12], %s782_s29 }
 0x167   : > { %1408 = dma.done.wait (%p1158_p7), %s793_s25, 768  }
 0x168   : > { %1410 = vsyncadd (%p1158_p7), %s793_s25, 4294966528  ;;  %s1698_s14 = sld [smem:[#allocation21_spill]] }
 0x169   : > { %s1699_s0 = sld [smem:[#allocation19_spill]] }
 0x16a   : > { %s1700_s1 = sld [smem:[#allocation20_spill]] }
 0x16b   : > { %s1701_s13 = sld [smem:[#allocation22_spill]] }
 0x16e   : > { %p40_p5 = scmp.ge.s32.totalorder %s1698_s14, 4  }
 0x170   :  { %42 = sbr.rel (!%p40_p5) target bundleno = 16 (0x10), region = 128 }
 0x175   :  { %799 = vsyncpa [#allocation8], 1 }
 0x176   :  { %801 = vsyncpa [#allocation8 + $0x1], 1 }
 0x177   :  { %802 = vsyncpa [#allocation9], 1 }
 0x178   :  { %804 = vsyncpa [#allocation9 + $0x1], 1 }
 0x179   :  { %805 = vsyncpa [#allocation12], 1 }
 0x17a   :  { %807 = vsyncpa [#allocation12 + $0x1], 1 }
 0x17b   :  { %808 = vsyncmov [#allocation2] }
 0x17e   :  { %s809_s20 = vpop.sfrf %808 }
 0x17f   :  { %p1093_p6 = scmp.ne.s32.totalorder %s809_s20, 0 }
 0x181   :  { %813 = shalt.err (%p1093_p6)  }

</bundles_post_ra>
